<compile_context>
chip_gen: v6e
topology: v6e:2x2x1
jax: 0.10.0
libtpu: 0.0.40
codegen_flags: <defaults>
</compile_context>

<pallas_src>
import math

import jax
import jax.numpy as jnp
from jax.experimental import pallas as pl
from jax.experimental.pallas import tpu as pltpu


def _stem_kernel(band_ref, w_ref, mask_ref, bias_ref, o_ref):
    # band_ref: (1, 9, mt)   bf16  rows k = dy*3 + ci; columns = flattened (r, c), row-aligned tile
    # w_ref:    (Cout, 32)   f32   folded conv*BN weights, K = kw*9 + kh*3 + ci (+ zero pads)
    # mask_ref: (2, mt)      f32   [0]: 0.0 at c==0 (kills the dx=-1 tap), [1]: 0.0 at c==W-1 (dx=+1 tap)
    # bias_ref: (Cout, 1)    f32   folded BN bias
    # o_ref:    (1, Cout, mt)      output tile (NCHW, flattened over H*W)
    b = band_ref[0].astype(jnp.float32)                       # (9, mt)
    m = mask_ref[...]
    lm = m[0:1, :]                                            # (1, mt)
    rm = m[1:2, :]

    # dx = -1 tap: value from flattened position p-1 (placeholder at column 0, masked to 0).
    left = jnp.concatenate([b[:, :1], b[:, :-1]], axis=1) * lm
    # dx = +1 tap: value from flattened position p+1 (placeholder at column W-1, masked to 0).
    right = jnp.concatenate([b[:, 1:], b[:, -1:]], axis=1) * rm

    k = 3 * b.shape[0]                                        # 27
    kp = w_ref.shape[1]                                       # 32 (padded K)
    pieces = [left, b, right]
    if kp > k:
        pieces.append(jnp.zeros((kp - k, b.shape[1]), dtype=jnp.float32))
    patch = jnp.concatenate(pieces, axis=0)                   # (32, mt)

    acc = jnp.dot(w_ref[...], patch, preferred_element_type=jnp.float32)   # (Cout, mt)
    o_ref[0] = (acc + bias_ref[...]).astype(o_ref.dtype)


def _pick_spatial_tile(H, W, target=8192):
    """Tile along flattened H*W: a multiple of lcm(W, 128) (row- and lane-aligned),
    close to `target`, never exceeding H*W (else the whole image is one block)."""
    M = H * W
    unit = W * (128 // math.gcd(W, 128))          # lcm(W, 128)
    if unit >= M:
        return M
    mt = max(unit, (target // unit) * unit)
    return min(mt, (M // unit) * unit)


def stem_forward(x, w_oihw, gamma, beta, running_mean, running_var,
                 eps=1e-5, use_bn=True, target_tile=8192):
    """stem forward: Conv2d(3->Cout, 3x3, pad=1, bias=False) + (optional) eval-mode BatchNorm2d.

    x: (N, 3, H, W) float32 (NCHW).  Returns (N, Cout, H, W) float32, matching PyTorch.
    """
    N, Cin, H, W = x.shape
    Cout = w_oihw.shape[0]
    M = H * W

    mt = _pick_spatial_tile(H, W, target_tile)
    Mp = ((M + mt - 1) // mt) * mt                 # pad band so all input block reads are in-bounds
    n_tiles = Mp // mt

    # --- dy row-bands: the only expanded buffer (3x the 3-channel input), stored in bf16 ---
    x_padh = jnp.pad(x, ((0, 0), (0, 0), (1, 1), (0, 0)))                         # pad rows only
    band = jnp.stack([x_padh[:, :, dy:dy + H, :] for dy in range(3)], axis=1)      # (N, 3, Cin, H, W)
    band = band.reshape(N, 3 * Cin, M).astype(jnp.bfloat16)
    if Mp > M:
        band = jnp.pad(band, ((0, 0), (0, 0), (0, Mp - M)))

    # --- weights (Cout, Cin, kh, kw) -> (Cout, K) with K = kw*9 + kh*3 + ci; fold BN scale; pad K->32 ---
    w2 = jnp.transpose(w_oihw, (0, 3, 2, 1)).reshape(Cout, 3 * 3 * Cin).astype(jnp.float32)
    if use_bn:
        inv_std = (gamma / jnp.sqrt(running_var + eps)).astype(jnp.float32)
        w2 = w2 * inv_std[:, None]
        bias = (beta - running_mean * inv_std).reshape(Cout, 1).astype(jnp.float32)
    else:
        bias = jnp.zeros((Cout, 1), jnp.float32)
    kp = ((3 * 3 * Cin + 7) // 8) * 8                      # 27 -> 32
    w2 = jnp.pad(w2, ((0, 0), (0, kp - 3 * 3 * Cin)))

    # --- column-edge masks: tiles are row-aligned, so one (2, mt) pattern serves every tile ---
    col = jnp.arange(mt, dtype=jnp.int32) % W
    masks = jnp.stack([(col != 0), (col != W - 1)]).astype(jnp.float32)            # (2, mt)

    # Rough per-call VMEM estimate -> keep the scoped limit sane on every generation.
    band_block = 3 * Cin * mt * 2
    out_block = Cout * mt * 4
    vmem_est = 2 * (band_block + out_block) + out_block + 4 * 3 * Cin * mt * 4 + kp * mt * 4
    vmem_limit = int(min(max(2 * vmem_est, 32 * 1024 * 1024), 64 * 1024 * 1024))

    out = pl.pallas_call(
        _stem_kernel,
        out_shape=jax.ShapeDtypeStruct((N, Cout, M), x.dtype),
        grid=(N, n_tiles),
        in_specs=[
            pl.BlockSpec((1, 3 * Cin, mt), lambda n, m: (n, 0, m)),
            pl.BlockSpec((Cout, kp), lambda n, m: (0, 0)),
            pl.BlockSpec((2, mt), lambda n, m: (0, 0)),
            pl.BlockSpec((Cout, 1), lambda n, m: (0, 0)),
        ],
        out_specs=pl.BlockSpec((1, Cout, mt), lambda n, m: (n, 0, m)),
        compiler_params=pltpu.CompilerParams(
            dimension_semantics=("parallel", "parallel"),
            vmem_limit_bytes=vmem_limit),
    )(band, w2, masks, bias)

    # (N, Cout, H*W) is already NCHW order; only a free reshape remains.
    return out.reshape(N, Cout, H, W)


if __name__ == "__main__":
    key = jax.random.PRNGKey(0)
    k_x, k_w, k_g, k_b = jax.random.split(key, 4)

    N, Cin, H, W = 2, 3, 16, 16
    Cout = 32  # out_channels

    x = jax.random.normal(k_x, (N, Cin, H, W), dtype=jnp.float32)
    # Conv2d weight (OIHW), bias=False
    w = jax.random.normal(k_w, (Cout, Cin, 3, 3), dtype=jnp.float32) * 0.1
    # BatchNorm2d params (synthetic affine; running stats at PyTorch defaults)
    gamma = 1.0 + 0.01 * jax.random.normal(k_g, (Cout,), dtype=jnp.float32)
    beta = 0.01 * jax.random.normal(k_b, (Cout,), dtype=jnp.float32)
    running_mean = jnp.zeros((Cout,), dtype=jnp.float32)
    running_var = jnp.ones((Cout,), dtype=jnp.float32)

    out = stem_forward(x, w, gamma, beta, running_mean, running_var)
    out = jax.block_until_ready(out)

    # Reference: full-precision XLA conv (NCHW) + folded eval-mode BN.
    ref = jax.lax.conv_general_dilated(
        x, w, window_strides=(1, 1), padding=((1, 1), (1, 1)),
        dimension_numbers=("NCHW", "OIHW", "NCHW"),
        precision=jax.lax.Precision.HIGHEST)
    inv_std = gamma / jnp.sqrt(running_var + 1e-5)
    ref = ref * inv_std.reshape(1, Cout, 1, 1) + (beta - running_mean * inv_std).reshape(1, Cout, 1, 1)

    assert out.shape == (N, Cout, H, W)
    # The kernel streams bf16 operands into the (bf16-native) MXU, so compare with
    # bf16-level tolerance against the f32 reference.
    max_err = float(jnp.max(jnp.abs(out - ref)))
    assert jnp.allclose(out, ref, atol=5e-2, rtol=5e-2), f"max abs err {max_err}"

    print("KERNEL_OK")
</pallas_src>

<mosaic_0001>
module attributes {stable_mosaic.version = 11 : i64} {
  func.func @_stem_kernel(%arg0: i32, %arg1: i32, %arg2: memref<1x9x256xbf16, #tpu.memory_space<vmem>>, %arg3: memref<32x32xf32, #tpu.memory_space<vmem>>, %arg4: memref<2x256xf32, #tpu.memory_space<vmem>>, %arg5: memref<32x1xf32, #tpu.memory_space<vmem>>, %arg6: memref<1x32x256xf32, #tpu.memory_space<vmem>>) attributes {dimension_semantics = [#tpu.dimension_semantics<parallel>, #tpu.dimension_semantics<parallel>], iteration_bounds = array<i64: 2, 1>, scalar_prefetch = 0 : i64, scratch_operands = 0 : i64, tpu.core_type = #tpu.core_type<tc>, window_params = [{transform_indices = @transform_0, window_bounds = array<i64: 1, 9, 256>}, {pipeline_mode = #tpu.pipeline_mode<synchronous>, transform_indices = @transform_1, window_bounds = array<i64: 32, 32>}, {pipeline_mode = #tpu.pipeline_mode<synchronous>, transform_indices = @transform_2, window_bounds = array<i64: 2, 256>}, {pipeline_mode = #tpu.pipeline_mode<synchronous>, transform_indices = @transform_3, window_bounds = array<i64: 32, 1>}, {transform_indices = @transform_4, window_bounds = array<i64: 1, 32, 256>}]} {
    %c0 = arith.constant 0 : index
    %c0_0 = arith.constant 0 : index
    %c0_1 = arith.constant 0 : index
    %0 = vector.load %arg2[%c0, %c0_0, %c0_1] : memref<1x9x256xbf16, #tpu.memory_space<vmem>>, vector<1x9x256xbf16>
    %1 = vector.shape_cast %0 : vector<1x9x256xbf16> to vector<9x256xbf16>
    %2 = arith.extf %1 : vector<9x256xbf16> to vector<9x256xf32>
    %c0_2 = arith.constant 0 : index
    %c0_3 = arith.constant 0 : index
    %3 = vector.load %arg4[%c0_2, %c0_3] : memref<2x256xf32, #tpu.memory_space<vmem>>, vector<2x256xf32>
    %4 = vector.extract_strided_slice %3 {offsets = [0, 0], sizes = [1, 256], strides = [1, 1]} : vector<2x256xf32> to vector<1x256xf32>
    %5 = vector.extract_strided_slice %3 {offsets = [1, 0], sizes = [1, 256], strides = [1, 1]} : vector<2x256xf32> to vector<1x256xf32>
    %6 = vector.extract_strided_slice %2 {offsets = [0, 0], sizes = [9, 1], strides = [1, 1]} : vector<9x256xf32> to vector<9x1xf32>
    %7 = vector.extract_strided_slice %2 {offsets = [0, 0], sizes = [9, 255], strides = [1, 1]} : vector<9x256xf32> to vector<9x255xf32>
    %8 = tpu.concatenate %6, %7 in 1 : vector<9x1xf32>, vector<9x255xf32> -> vector<9x256xf32>
    %9 = vector.broadcast %4 : vector<1x256xf32> to vector<9x256xf32>
    %10 = arith.mulf %8, %9 : vector<9x256xf32>
    %11 = vector.extract_strided_slice %2 {offsets = [0, 1], sizes = [9, 255], strides = [1, 1]} : vector<9x256xf32> to vector<9x255xf32>
    %12 = vector.extract_strided_slice %2 {offsets = [0, 255], sizes = [9, 1], strides = [1, 1]} : vector<9x256xf32> to vector<9x1xf32>
    %13 = tpu.concatenate %11, %12 in 1 : vector<9x255xf32>, vector<9x1xf32> -> vector<9x256xf32>
    %14 = vector.broadcast %5 : vector<1x256xf32> to vector<9x256xf32>
    %15 = arith.mulf %13, %14 : vector<9x256xf32>
    %cst = arith.constant 0.000000e+00 : f32
    %16 = vector.broadcast %cst : f32 to vector<5x256xf32>
    %17 = tpu.concatenate %10, %2, %15, %16 in 0 : vector<9x256xf32>, vector<9x256xf32>, vector<9x256xf32>, vector<5x256xf32> -> vector<32x256xf32>
    %c0_4 = arith.constant 0 : index
    %c0_5 = arith.constant 0 : index
    %18 = vector.load %arg3[%c0_4, %c0_5] : memref<32x32xf32, #tpu.memory_space<vmem>>, vector<32x32xf32>
    %cst_6 = arith.constant dense<0.000000e+00> : vector<32x256xf32>
    %19 = tpu.matmul %18, %17, %cst_6 {dimension_numbers = #tpu.dot_dimension_numbers<[1], [0], [0], [1], [0, 0, 1, 1], [], []>} : vector<32x32xf32>, vector<32x256xf32>, vector<32x256xf32> -> vector<32x256xf32>
    %c0_7 = arith.constant 0 : index
    %c0_8 = arith.constant 0 : index
    %20 = vector.load %arg5[%c0_7, %c0_8] : memref<32x1xf32, #tpu.memory_space<vmem>>, vector<32x1xf32>
    %21 = vector.broadcast %20 : vector<32x1xf32> to vector<32x256xf32>
    %22 = arith.addf %19, %21 : vector<32x256xf32>
    %c0_9 = arith.constant 0 : index
    %c0_10 = arith.constant 0 : index
    %c0_11 = arith.constant 0 : index
    %23 = vector.load %arg6[%c0_9, %c0_10, %c0_11] : memref<1x32x256xf32, #tpu.memory_space<vmem>>, vector<1x32x256xf32>
    %24 = vector.shape_cast %23 : vector<1x32x256xf32> to vector<32x256xf32>
    %25 = vector.shape_cast %22 : vector<32x256xf32> to vector<1x32x256xf32>
    tpu.vector_store %arg6[%c0_9, %c0_10, %c0_11], %25 {strides = array<i32>} : memref<1x32x256xf32, #tpu.memory_space<vmem>>, vector<1x32x256xf32>,
    return
  }
  func.func @transform_0(%arg0: i32, %arg1: i32) -> (i32, i32, i32) {
    %c0_i32 = arith.constant 0 : i32
    %c0_i32_0 = arith.constant 0 : i32
    return %arg0, %c0_i32, %arg1 : i32, i32, i32
  }
  func.func @transform_1(%arg0: i32, %arg1: i32) -> (i32, i32) {
    %c0_i32 = arith.constant 0 : i32
    %c0_i32_0 = arith.constant 0 : i32
    %c0_i32_1 = arith.constant 0 : i32
    return %c0_i32, %c0_i32_0 : i32, i32
  }
  func.func @transform_2(%arg0: i32, %arg1: i32) -> (i32, i32) {
    %c0_i32 = arith.constant 0 : i32
    %c0_i32_0 = arith.constant 0 : i32
    %c0_i32_1 = arith.constant 0 : i32
    return %c0_i32, %c0_i32_0 : i32, i32
  }
  func.func @transform_3(%arg0: i32, %arg1: i32) -> (i32, i32) {
    %c0_i32 = arith.constant 0 : i32
    %c0_i32_0 = arith.constant 0 : i32
    %c0_i32_1 = arith.constant 0 : i32
    return %c0_i32, %c0_i32_0 : i32, i32
  }
  func.func @transform_4(%arg0: i32, %arg1: i32) -> (i32, i32, i32) {
    %c0_i32 = arith.constant 0 : i32
    %c0_i32_0 = arith.constant 0 : i32
    return %arg0, %c0_i32, %arg1 : i32, i32, i32
  }
}

</mosaic_0001>

<bundles_post_ra>
// kernel: tpu_custom_call.1
= control target key start
LH: loop header
LB: loop body
LE: loop exit
PB: predicated region body
PF: predicated region fallthrough
CT: control target
= control target key end

     0   :  { %9 = vsyncpa [#allocation3], 0  ;;  %s998_s0 = inlined_call_operand.vmem [shape: bf16[2,9,256], index: 0, kind: input, shape index: {}]   ;;  %s999_s1 = inlined_call_operand.vmem [shape: f32[32,32], index: 1, kind: input, shape index: {}]   ;;  %s1000_s2 = inlined_call_operand.vmem [shape: f32[2,256], index: 2, kind: input, shape index: {}]   ;;  %s1001_s3 = inlined_call_operand.vmem [shape: f32[32,1], index: 3, kind: input, shape index: {}]   ;;  %s1002_s4 = inlined_call_operand.hbm [shape: f32[2,32,256], index: 4, kind: output, shape index: {}]  }
   0x1   :  { %11 = vsyncpa [#allocation3 + $0x1], 0  ;;  %s805_s15 = smov 0   ;;  %s807_s16 = smov 0  }
   0x2   :  { %s809_s17 = smov 0   ;;  %s811_s18 = smov 0  }
   0x3   :  { %s813_s19 = smov 0   ;;  %s815_s20 = smov 0  }
   0x4 LB: > { %s583_s21 = sadd.s32 4294967295, %s771_s20   ;;  %s584_s22 = sadd.s32 4294967294, %s771_s20   ;;  %s771_s20 = sphi %s815_s20, %s17_s20   ;;  %s767_s19 = sphi %s813_s19, %s1009_s19   ;;  %s763_s18 = sphi %s811_s18, %s1008_s18   ;;  %s759_s17 = sphi %s809_s17, %s1007_s17   ;;  %s755_s16 = sphi %s807_s16, %s1006_s16   ;;  %s751_s15 = sphi %s805_s15, %s1005_s15  }
   0x5   : > { %s29_s23 = sadd.s32 1, %s767_s19  ;;  %s129_s24 = sadd.s32 1, %s759_s17 }
   0x6   : > { %p31_p0 = scmp.ge.s32.totalorder %s29_s23, 2  ;;  %p139_p1 = scmp.ne.s32.totalorder %s759_s17, %s755_s16 }
   0x7   : > { %p140_p2 = scmp.eq.s32.totalorder %s583_s21, 1  ;;  %p145_p3 = scmp.ne.s32.totalorder %s755_s16, %s751_s15 }
   0x8   : > { %s1011_s23 = smov (%p31_p0, %s29_s23), 0  ;;  %p146_p5 = scmp.eq.s32.totalorder %s584_s22, 1 }
   0x9   : > { %p845_p4 = por %p140_p2, %p139_p1  ;;  %s124_s26 = ssub.s32 %s767_s19, %s1011_s23 }
   0xa   : > { %p587_p6 = scmp.ge.s32.totalorder %s771_s20, 1  ;;  %p127_p7 = scmp.eq.s32.totalorder %s124_s26, 0 }
   0xb   : > { %p852_p8 = por %p146_p5, %p145_p3  ;;  %p186_p9 = scmp.lt.s32.totalorder %s771_s20, 3 }
   0xc   : > { %s858_s28 = scalar_select %p127_p7, %s759_s17, %s129_s24  }
   0xd   : > { %p187_p10 = pnand %p587_p6, %p186_p9 }
   0xe   : > { %p217_p11 = scmp.lt.s32.totalorder (!%p187_p10), %s763_s18, 1  ;;  %s773_s8 = smov (!%p187_p10), 127  }
   0xf   : > { %190 = sbr.rel (%p187_p10) target bundleno = 378 (0x17a), region = 36  ;;  %s774_s9 = smov (!%p187_p10), 1  }
  0x10   : > { %s213_s12 = sand.u32 (!%p187_p10), 1, %s755_s16   ;;  %s603_s21 = sshll.u32 (!%p187_p10), %s763_s18, 10 }
  0x11   : > { %s588_s13 = sshll.u32 (!%p187_p10), %s213_s12, 6  ;;  %s777_s5 = smov (!%p187_p10), [#allocation2]  }
  0x12   : > { %s215_s14 = scalar_lea.vmem (!%p187_p10), [#allocation2], %s588_s13  ;;  %s699_s6 = sshll.u32 (!%p187_p10), %s777_s5, 4  ;;  %s700_s6 = int_to_ptr.vmem [resolvable:$false] %s699_s6 }
  0x13   : > { %s504_s22 = sshll.u32 (!%p187_p10), %s215_s14, 4  ;;  %s949_s22 = int_to_ptr.vmem [resolvable:$true] %s504_s22 }
  0x14   : > { %s218_s29 = scalar_select %p217_p11, %s763_s18, 1  ;;  %v775_v10 = vmov 0.0   ;;  %v355_v11 = vld [vmem:[%s1001_s3 + $0x8] sm:$0xff]  ;;  %v354_v12 = vld [vmem:[%s1001_s3] sm:$0xff]  ;;  %v776_v13 = vmov 0   ;;  %v356_v14 = vld [vmem:[%s1001_s3 + $0x10] sm:$0xff]  ;;  %v256_v16 = vlaneseq }
  0x15   : > { %455 = vmatprep.mubr.f32.mxu0 %v775_v10  ;;  %467 = vmatprep.mubr.f32.mxu1 %v775_v10  ;;  %v357_v15 = vld [vmem:[%s1001_s3 + $0x18] sm:$0xff]  ;;  %v233_v19 = vld [vmem:[%s1000_s2] sm:$0xf]  ;;  %vm286_vm0 = vcmask 1039360   ;;  %vm317_vm1 = vcmask 1040384   ;;  %vm246_vm2 = vcmask 7168   ;;  %p702_p1 = scmp.lt.s32.totalorder %s949_s22, %s700_s6 }
  0x16   : > { %s602_s30 = sshll.u32 %s218_s29, 4  ;;  %694 = vset.pattern.permute.xlu1 %v776_v13  ;;  %693 = vset.pattern.permute.xlu0 %v776_v13  ;;  %v257_v17 = vshrl.u32 %v256_v16, 7  ;;  %vm332_vm3 = vcmask 1041408   ;;  %vm347_vm4 = vcmask 1042432   ;;  %vm378_vm5 = vcmask 261120   ;;  %v352_v13 = vld [vmem:[%s999_s1 + $0x10] sm:$0xff]  ;;  %s947_s29 = scalar_lea.hbm %s1002_s4, %s603_s21 }
  0x17   : > { %s224_s7 = scalar_lea.vmem %s998_s0, %s602_s30  ;;  %s953_s18 = scalar_lea.sflag [#allocation3], %s213_s12 }
  0x18   : > { %v227_v0 = vld [vmem:[%s224_s7] sm:$0xff]  ;;  %v228_v1 = vld [vmem:[%s224_s7 + $0x8] sm:$0x11]  ;;  %v301_v18 = vsub.s32 3, %v257_v17  ;;  %v297_v20 = vsub.s32 1, %v257_v17  ;;  %v262_v22 = vsub.s32 2, %v257_v17 }
  0x19   : > { %v865_v2 = vunpack.c.h.bf16 %v227_v0  ;;  %v867_v3 = vunpack.c.l.bf16 %v228_v1  ;;  %v869_v4 = vunpack.c.h.bf16 %v228_v1  ;;  %v871_v5 = vunpack.c.l.bf16 %v227_v0  ;;  %s695_s30 = scalar_lea.vmem %s949_s22, 1024  ;;  %s701_s7 = scalar_lea.vmem %s700_s6, 2048 }
  0x1a   : > { %v302_v21 = vrot.slane %v233_v19, %v301_v18  ;;  %v298_v23 = vrot.slane %v233_v19, %v297_v20  ;;  %v258_v24 = vsub.s32 0, %v257_v17  ;;  %v263_v30 = vrot.slane %v233_v19, %v262_v22  ;;  %p696_p12 = scmp.ne.s32.totalorder %s949_s22, %s695_s30  ;;  %p703_p2 = scmp.lt.s32.totalorder %s701_s7, %s695_s30 }
  0x1b   : > { %v673_v6 = vpack.i.bf16 %v869_v4, %v865_v2  ;;  %v683_v7 = vpack.i.bf16 %v869_v4, %v867_v3  ;;  %v678_v8 = vpack.i.bf16 %v867_v3, %v871_v5  ;;  %v688_v9 = vpack.i.bf16 %v865_v2, %v871_v5 }
  0x1c   : > { %v312_v27 = vrot.slane %v302_v21, %v297_v20  ;;  %v308_v35 = vrot.slane %v298_v23, %v297_v20  ;;  %v259_v36 = vrot.slane %v233_v19, %v258_v24  ;;  %v319_v41 = vrot.slane %v865_v2, 7  ;;  %p697_p13 = pnand %p696_p12, %p845_p4  ;;  %p704_p3 = por %p703_p2, %p702_p1 }
  0x1d   : > { %674 = vrot.lane.b32.xlu0 %v673_v6, %s773_s8  ;;  %684 = vrot.lane.b32.xlu1 %v683_v7, %s774_s9  ;;  %v322_v42 = vrot.slane %v869_v4, 7  ;;  %v318_v45 = vrot.slane %v871_v5, 7  ;;  %v273_v46 = vrot.slane %v263_v30, %v258_v24  ;;  %v320_v50 = vrot.slane %v867_v3, 7 }
  0x1e   : > { %v269_v58 = vrot.slane %v259_v36, %v258_v24  ;;  %p698_p0 = pneg %p697_p13 }
  0x1f   : > { %v323_v63 = vsel %vm317_vm1, %v319_v41, %v322_v42  ;;  %v321_v0 = vsel %vm317_vm1, %v318_v45, %v320_v50 }
  0x20   : > { %p705_p5 = pnand %p704_p3, %p698_p0 }
  0x21   : > { %679 = vrot.lane.b32.xlu0 %v678_v8, %s773_s8  ;;  %689 = vrot.lane.b32.xlu1 %v688_v9, %s774_s9 }
  0x25   : > { %365 = vperm.xlu1 %694, %v355_v11   ;;  %360 = vperm.xlu0 %693, %v354_v12   ;;  %v350_v12 = vld [vmem:[%s999_s1] sm:$0xff] }
  0x29   : > { %370 = vperm.xlu1 %694, %v356_v14   ;;  %375 = vperm.xlu0 %693, %v357_v15   ;;  %v351_v14 = vld [vmem:[%s999_s1 + $0x8] sm:$0xff]  ;;  %v353_v15 = vld [vmem:[%s999_s1 + $0x18] sm:$0xff] }
  0x8f   : > { %v675_v25 = vpop.permute.xlu0 %674  ;;  %v685_v26 = vpop.permute.xlu1 %684 }
  0x90   : > { %v677_v28 = vunpack.i.h.bf16 %v675_v25  ;;  %v676_v29 = vunpack.i.l.bf16 %v675_v25  ;;  %v687_v31 = vunpack.i.h.bf16 %v685_v26  ;;  %v686_v32 = vunpack.i.l.bf16 %v685_v26 }
  0x92   : > { %v294_v33 = vsel %vm286_vm0, %v677_v28, %v869_v4  ;;  %v293_v34 = vsel %vm286_vm0, %v676_v29, %v865_v2  ;;  %v248_v47 = vsel %vm246_vm2, %v686_v32, %v687_v31  ;;  %v254_v59 = vsel %vm246_vm2, %v867_v3, %v686_v32 }
  0x93   : > { %v680_v37 = vpop.permute.xlu0 %679  ;;  %v314_v38 = vmul.f32 %v312_v27, %v293_v34  ;;  %v316_v39 = vmul.f32 %v312_v27, %v294_v33  ;;  %v690_v40 = vpop.permute.xlu1 %689  ;;  %v277_v60 = vmul.f32 %v273_v46, %v248_v47  ;;  %v276_v4 = vmul.f32 %v269_v58, %v254_v59 }
  0x94   : > { %v682_v43 = vunpack.i.h.bf16 %v680_v37  ;;  %v681_v44 = vunpack.i.l.bf16 %v680_v37  ;;  %v692_v53 = vunpack.i.h.bf16 %v690_v40  ;;  %v691_v54 = vunpack.i.l.bf16 %v690_v40 }
  0x95   : > { %v334_v48 = vrot.slane %v314_v38, 6  ;;  %v337_v49 = vrot.slane %v316_v39, 6  ;;  %v344_v7 = vsel %vm317_vm1, %v277_v60, %v319_v41 }
  0x96   : > { %v288_v51 = vsel %vm286_vm0, %v682_v43, %v677_v28  ;;  %v287_v52 = vsel %vm286_vm0, %v681_v44, %v676_v29  ;;  %v247_v1 = vsel %vm246_vm2, %v691_v54, %v692_v53  ;;  %v253_v6 = vsel %vm246_vm2, %v871_v5, %v691_v54 }
  0x97   : > { %v338_v55 = vsel %vm332_vm3, %v334_v48, %v337_v49  ;;  %v313_v56 = vmul.f32 %v308_v35, %v287_v52  ;;  %v315_v57 = vmul.f32 %v308_v35, %v288_v51  ;;  %v346_v3 = vsel %vm332_vm3, %v323_v63, %v334_v48 }
  0x98   : > { %591 = vmatprep.subr.msk.mxu0 %vm347_vm4, %v338_v55  ;;  %604 = vmatprep.subr.msk.mxu1 %vm347_vm4, %v338_v55  ;;  %v275_v9 = vmul.f32 %v273_v46, %v247_v1  ;;  %v274_v11 = vmul.f32 %v269_v58, %v253_v6  ;;  %v343_v5 = vsel %vm317_vm1, %v276_v4, %v318_v45 }
  0x99   : > { %v333_v61 = vrot.slane %v313_v56, 6  ;;  %v335_v62 = vrot.slane %v315_v57, 6 }
  0x9b   : > { %v336_v2 = vsel %vm332_vm3, %v333_v61, %v335_v62  ;;  %v345_v8 = vsel %vm332_vm3, %v321_v0, %v333_v61 }
  0x9c   : > { %592 = vmatpush1.msk.msra.mxu0 %vm347_vm4, %v336_v2  ;;  %608 = vmatpush1.msk.msra.mxu1 %vm347_vm4, %v336_v2 }
  0x9d   : > { %417 = vmatprep.subr.mxu0 %v346_v3  ;;  %605 = vmatprep.subr.mxu1 %v346_v3 }
  0x9e   : > { %418 = vmatpush1.msra.mxu0 %v345_v8  ;;  %609 = vmatpush1.msra.mxu1 %v345_v8 }
  0x9f   : > { %419 = vmatprep.subr.mxu0 %v344_v7  ;;  %606 = vmatprep.subr.mxu1 %v344_v7 }
  0xa0   : > { %420 = vmatpush1.msra.mxu0 %v343_v5  ;;  %610 = vmatpush1.msra.mxu1 %v343_v5  ;;  %v366_v16 = vpop.permute.xlu1 %365  ;;  %v361_v17 = vpop.permute.xlu0 %360 }
  0xa1   : > { %421 = vmatprep.subr.mxu0 %v275_v9  ;;  %607 = vmatprep.subr.mxu1 %v275_v9 }
  0xa2   : > { %422 = vmatpush1.msra.mxu0 %v274_v11  ;;  %611 = vmatpush1.msra.mxu1 %v274_v11 }
  0xa3   : > { %593 = vmatmul.mubr.msk.f32.vlgmr.msra.gmra.mxu0 %vm378_vm5, %v350_v12  ;;  %595 = vmatmul.mubr.msk.f32.vlgmr.msra.gmra.mxu1 %vm378_vm5, %v352_v13 }
  0xa4   : > { %461 = vmatprep.mubr.f32.mxu0 %v775_v10  ;;  %473 = vmatprep.mubr.f32.mxu1 %v775_v10  ;;  %v371_v18 = vpop.permute.xlu1 %370  ;;  %v376_v24 = vpop.permute.xlu0 %375 }
  0xa7   : > { %594 = vmatmul.mubr.msk.f32.gmra.mxu0 %vm378_vm5, %v351_v14  ;;  %596 = vmatmul.mubr.msk.f32.gmra.mxu1 %vm378_vm5, %v353_v15 }
 0x163   : > { %v457_v19 = vpop.f32.mrf.mxu0  ;;  %v469_v20 = vpop.f32.mrf.mxu1 }
 0x164   : > { %v458_v10 = vadd.f32 %v457_v19, %v361_v17  ;;  %v470_v21 = vadd.f32 %v469_v20, %v371_v18 }
 0x165   : > { %v459_v22 = vpop.f32.mrf.mxu0  ;;  %v471_v23 = vpop.f32.mrf.mxu1 }
 0x166   : > { %480 = vst [vmem:[%s215_s14] sm:$0xff] %v458_v10  ;;  %484 = vst [vmem:[%s215_s14 + $0x20] sm:$0xff] %v470_v21  ;;  %v460_v25 = vadd.f32 %v459_v22, %v361_v17  ;;  %v472_v26 = vadd.f32 %v471_v23, %v371_v18 }
 0x167   : > { %v463_v27 = vpop.f32.mrf.mxu0  ;;  %v475_v28 = vpop.f32.mrf.mxu1 }
 0x168   : > { %481 = vst [vmem:[%s215_s14 + $0x8] sm:$0xff] %v460_v25  ;;  %485 = vst [vmem:[%s215_s14 + $0x28] sm:$0xff] %v472_v26  ;;  %v464_v29 = vadd.f32 %v463_v27, %v366_v16  ;;  %v476_v30 = vadd.f32 %v475_v28, %v376_v24 }
 0x169   : > { %v465_v31 = vpop.f32.mrf.mxu0  ;;  %v477_v32 = vpop.f32.mrf.mxu1 }
 0x16a   : > { %482 = vst [vmem:[%s215_s14 + $0x10] sm:$0xff] %v464_v29  ;;  %486 = vst [vmem:[%s215_s14 + $0x30] sm:$0xff] %v476_v30  ;;  %v466_v33 = vadd.f32 %v465_v31, %v366_v16  ;;  %v478_v34 = vadd.f32 %v477_v32, %v376_v24 }
 0x16c   : > { %483 = vst [vmem:[%s215_s14 + $0x18] sm:$0xff] %v466_v33  ;;  %487 = vst [vmem:[%s215_s14 + $0x38] sm:$0xff] %v478_v34 }
 0x16d   : > { %708 = shalt.err (!%p705_p5)
}
 0x16e   : > { %s709_s8 = scalar_lea.hbm %s947_s29, 1024  ;;  %s713_s11 = scalar_lea.hbm %s1002_s4, 2048 }
 0x16f   : > { %p710_p6 = scmp.ne.s32.totalorder %s947_s29, %s709_s8  ;;  %p714_p10 = scmp.lt.s32.totalorder %s947_s29, %s1002_s4 }
 0x170   : > { %p715_p11 = scmp.lt.s32.totalorder %s713_s11, %s709_s8 }
 0x171   : > { %p711_p7 = pnand %p710_p6, %p845_p4 }
 0x172   : > { %p716_p12 = por %p715_p11, %p714_p10 }
 0x173   : > { %p712_p9 = pneg %p711_p7 }
 0x175   : > { %p717_p13 = pnand %p716_p12, %p712_p9 }
 0x177   : > { %720 = shalt.err (!%p717_p13)
}
 0x178   : > { %s778_s14 = smov 256   ;;  %s779_s21 = smov 16  }
 0x179   : > { %612 = dma.vmem_to_hbm [thread:$0]  (%p845_p4), %s949_s22, 1024, %s947_s29, %s953_s18, %s778_s14, %s778_s14, %s779_s21  }
 0x17a PF: > { %p618_p0 = scmp.ge.s32.totalorder %s771_s20, 2  ;;  %s519_s24 = sand.u32 1, %s751_s15  }
 0x17b   : > { %s520_s26 = scalar_lea.sflag [#allocation3], %s519_s24 }
 0x17c   : > { %p615_p1 = pnand %p618_p0, %p852_p8 }
 0x17e   : > { %p616_p2 = pneg %p615_p1 }
 0x180   : > { %746 = dma.done.wait (%p616_p2), %s520_s26, 1024  }
 0x181   : > { %748 = vsyncadd (%p616_p2), %s520_s26, 4294966272  ;;  %s17_s20 = sadd.s32 1, %s771_s20   ;;  %s1005_s15 = smov %s755_s16 }
 0x182   : > { %p14_p3 = scmp.ge.s32.totalorder %s17_s20, 4   ;;  %s1006_s16 = smov %s759_s17 }
 0x183   : > { %s1007_s17 = smov %s858_s28  ;;  %s1008_s18 = smov %s767_s19 }
 0x184   : > { %s1009_s19 = smov %s1011_s23  ;;  %16 = sbr.rel (!%p14_p3) target bundleno = 4 (0x4), region = 71 }
 0x189   :  { %525 = vsyncpa [#allocation3], 1 }
 0x18a   :  { %527 = vsyncpa [#allocation3 + $0x1], 1 }

</bundles_post_ra>
